<compile_context>
chip_gen: v6e
topology: v6e:2x2x1
jax: 0.10.0
libtpu: 0.0.40
codegen_flags: <defaults>
</compile_context>

<pallas_src>
import jax
import jax.numpy as jnp
from jax import lax
from jax.experimental import pallas as pl
from jax.experimental.pallas import tpu as pltpu

BN_EPS = 1e-5


def _round_up(x, m):
    return (x + m - 1) // m * m


def _pick_tile(hw, c_in):
    """Pixel-tile length: full extent for small inputs (no padding waste),
    otherwise a multiple of 512 sized for ~1 MiB f32 input blocks so the
    ~0.35us per-grid-step overhead is amortized."""
    if hw < 512:
        return hw
    blocks_512 = max(1, min(4, (1 << 20) // max(c_in * 4 * 512, 1)))
    return 512 * blocks_512


def _stats_kernel(x1_ref, x2_ref, w1_ref, w2_ref, psum_ref, psumsq_ref):
    """Accumulate per-channel sum(y) and sum(y*y) for both conv halves.

    The output refs themselves are the accumulators: their block index is
    constant along the pixel-tile axis, so the VMEM buffer persists across
    tiles of one batch element; zeroed at the first tile via pl.when.
    """
    t = pl.program_id(1)

    @pl.when(t == 0)
    def _():
        psum_ref[...] = jnp.zeros_like(psum_ref)
        psumsq_ref[...] = jnp.zeros_like(psumsq_ref)

    x1 = x1_ref[0]                                       # (C_in, TILE)
    x2 = x2_ref[0]
    y1 = jnp.dot(w1_ref[...], x1, preferred_element_type=jnp.float32)  # (C_half, TILE)
    y2 = jnp.dot(w2_ref[...], x2, preferred_element_type=jnp.float32)

    psum_ref[0, 0] += jnp.sum(y1, axis=1, keepdims=True)
    psum_ref[0, 1] += jnp.sum(y2, axis=1, keepdims=True)
    psumsq_ref[0, 0] += jnp.sum(y1 * y1, axis=1, keepdims=True)
    psumsq_ref[0, 1] += jnp.sum(y2 * y2, axis=1, keepdims=True)


def _norm_kernel(x1_ref, x2_ref, w1_ref, w2_ref, scale_ref, shift_ref, o_ref):
    """Recompute the 1x1 convs for this tile and apply folded BN + ReLU.

    The two conv halves are stored to separate leading-index slots of the
    output block -> no channel concat, no lane relayout, lane-dense stores.
    """
    x1 = x1_ref[0]
    x2 = x2_ref[0]
    y1 = jnp.dot(w1_ref[...], x1, preferred_element_type=jnp.float32)
    y2 = jnp.dot(w2_ref[...], x2, preferred_element_type=jnp.float32)
    o_ref[0, 0] = jnp.maximum(y1 * scale_ref[0] + shift_ref[0], 0.0).astype(o_ref.dtype)
    o_ref[0, 1] = jnp.maximum(y2 * scale_ref[1] + shift_ref[1], 0.0).astype(o_ref.dtype)


@jax.jit
def double_factorized_reduce(x_nchw, w1, w2, gamma, beta):
    """x_nchw: (N, C_in, H, W) f32.  w1/w2: (C_out//2, C_in) 1x1-conv weights.
    gamma/beta: (C_out,).  Returns (N, C_out, Ho, Wo) in PyTorch NCHW layout."""
    N, C_in, H, W = x_nchw.shape
    C_half = w1.shape[0]
    C_out = 2 * C_half
    f32 = jnp.float32

    # Stride-4 pixel selection for the two conv paths (conv_2 sees the (1,1)
    # spatial shift).  Pure strided slices in NCHW: no transposes needed for
    # the channels-first kernel layout; XLA fuses slice + reshape (+ pad).
    x1 = x_nchw[:, :, 0::4, 0::4]
    x2 = x_nchw[:, :, 1::4, 1::4]
    Ho, Wo = x1.shape[2], x1.shape[3]
    assert x2.shape[2] == Ho and x2.shape[3] == Wo, (
        "conv_1/conv_2 spatial dims must match for the channel concat")

    HWo = Ho * Wo
    tile = _pick_tile(HWo, C_in)
    HWp = _round_up(HWo, tile)
    num_tiles = HWp // tile

    x1f = x1.reshape(N, C_in, HWo).astype(f32)
    x2f = x2.reshape(N, C_in, HWo).astype(f32)
    if HWp != HWo:
        pad = ((0, 0), (0, 0), (0, HWp - HWo))
        x1f = jnp.pad(x1f, pad)   # zero pads contribute nothing to the BN sums
        x2f = jnp.pad(x2f, pad)

    w1f = w1.astype(f32)          # (C_half, C_in)
    w2f = w2.astype(f32)

    x_spec = pl.BlockSpec((1, C_in, tile), lambda n, t: (n, 0, t))
    w_spec = pl.BlockSpec((C_half, C_in), lambda n, t: (0, 0))

    # ---- pass 1: per-(batch, half, channel) partial sums of y and y^2 ------
    stats_flops = 2 * C_in * C_out * N * HWp + 3 * C_out * N * HWp
    stats_bytes = (2 * N * HWp * C_in + 2 * C_half * C_in + 4 * C_half * N) * 4
    psum, psumsq = pl.pallas_call(
        _stats_kernel,
        grid=(N, num_tiles),
        in_specs=[x_spec, x_spec, w_spec, w_spec],
        out_specs=[
            pl.BlockSpec((1, 2, C_half, 1), lambda n, t: (n, 0, 0, 0)),
            pl.BlockSpec((1, 2, C_half, 1), lambda n, t: (n, 0, 0, 0)),
        ],
        out_shape=(
            jax.ShapeDtypeStruct((N, 2, C_half, 1), f32),
            jax.ShapeDtypeStruct((N, 2, C_half, 1), f32),
        ),
        compiler_params=pltpu.CompilerParams(
            dimension_semantics=("parallel", "arbitrary")),
        cost_estimate=pl.CostEstimate(
            flops=stats_flops, transcendentals=0, bytes_accessed=stats_bytes),
    )(x1f, x2f, w1f, w2f)

    # ---- fold BN (training-mode batch stats, biased variance) into ---------
    # ---- a per-channel scale/shift (tiny O(C_out) work)             --------
    cnt = jnp.float32(N * HWo)                 # true pixel count (no padding)
    mean = jnp.sum(psum, axis=0) / cnt         # (2, C_half, 1)
    ex2 = jnp.sum(psumsq, axis=0) / cnt
    var = jnp.maximum(ex2 - mean * mean, 0.0)  # guard tiny negatives (1-pass var)
    gamma2 = gamma.astype(f32).reshape(2, C_half, 1)
    beta2 = beta.astype(f32).reshape(2, C_half, 1)
    scale = gamma2 * lax.rsqrt(var + BN_EPS)
    shift = beta2 - mean * scale

    # ---- pass 2: recompute the 1x1 convs, apply scale/shift + ReLU ---------
    norm_flops = 2 * C_in * C_out * N * HWp + 2 * C_out * N * HWp
    norm_bytes = (2 * N * HWp * C_in + N * HWp * C_out
                  + 2 * C_half * C_in + 4 * C_half) * 4
    out = pl.pallas_call(
        _norm_kernel,
        grid=(N, num_tiles),
        in_specs=[
            x_spec, x_spec, w_spec, w_spec,
            pl.BlockSpec((2, C_half, 1), lambda n, t: (0, 0, 0)),
            pl.BlockSpec((2, C_half, 1), lambda n, t: (0, 0, 0)),
        ],
        out_specs=pl.BlockSpec((1, 2, C_half, tile), lambda n, t: (n, 0, 0, t)),
        out_shape=jax.ShapeDtypeStruct((N, 2, C_half, HWp), f32),
        compiler_params=pltpu.CompilerParams(
            dimension_semantics=("parallel", "parallel")),
        cost_estimate=pl.CostEstimate(
            flops=norm_flops, transcendentals=0, bytes_accessed=norm_bytes),
    )(x1f, x2f, w1f, w2f, scale, shift)

    if HWp != HWo:
        out = out[:, :, :, :HWo]
    # (N, 2, C_half, Ho*Wo) -> (N, C_out, Ho, Wo): contiguous reshape, no copy.
    return out.reshape(N, C_out, Ho, Wo)


def _reference(x, w1, w2, gamma, beta):
    """Pure-jnp reference of the module's forward (intended semantics)."""
    x1 = x[:, :, 0::4, 0::4]
    x2 = x[:, :, 1::4, 1::4]
    y1 = jnp.einsum("nchw,oc->nohw", x1, w1)
    y2 = jnp.einsum("nchw,oc->nohw", x2, w2)
    y = jnp.concatenate([y1, y2], axis=1)
    mean = jnp.mean(y, axis=(0, 2, 3), keepdims=True)
    var = jnp.mean((y - mean) ** 2, axis=(0, 2, 3), keepdims=True)
    yh = (y - mean) * lax.rsqrt(var + BN_EPS)
    out = yh * gamma.reshape(1, -1, 1, 1) + beta.reshape(1, -1, 1, 1)
    return jnp.maximum(out, 0.0)


if __name__ == "__main__":
    # Small shapes consistent with the module: N=2, C_in=4, C_out=8, H=W=16.
    N, C_in, C_out, H, W = 2, 4, 8, 16, 16
    C_half = C_out // 2

    key = jax.random.PRNGKey(0)
    kx, k1, k2 = jax.random.split(key, 3)

    x = jax.random.normal(kx, (N, C_in, H, W), dtype=jnp.float32)

    # Deterministic kaiming_normal_ (mode='fan_out', relu): std = sqrt(2/fan_out),
    # fan_out = C_half for a 1x1 conv.  Weights stored as (C_half, C_in) (the
    # PyTorch conv weight with the 1x1 spatial dims squeezed).
    std = (2.0 / C_half) ** 0.5
    w1 = std * jax.random.normal(k1, (C_half, C_in), dtype=jnp.float32)
    w2 = std * jax.random.normal(k2, (C_half, C_in), dtype=jnp.float32)

    # BatchNorm2d affine params: weight=1, bias=0 (as in _initialize_weights).
    gamma = jnp.ones((C_out,), dtype=jnp.float32)
    beta = jnp.zeros((C_out,), dtype=jnp.float32)

    out = double_factorized_reduce(x, w1, w2, gamma, beta)
    out = jax.block_until_ready(out)

    assert out.shape == (N, C_out, H // 4, W // 4), out.shape
    assert bool(jnp.all(out >= 0.0))                      # ReLU
    # Loose sanity check vs a pure-jnp reference (tolerance absorbs possible
    # differences in default f32 MXU precision between Mosaic and XLA).
    ref = _reference(x, w1, w2, gamma, beta)
    max_err = float(jnp.max(jnp.abs(out - ref)))
    assert max_err < 5e-2, f"max abs err {max_err}"
    print("KERNEL_OK")
</pallas_src>

<mosaic_0001>
module attributes {stable_mosaic.version = 11 : i64} {
  func.func @_stats_kernel(%arg0: i32, %arg1: i32, %arg2: memref<1x4x16xf32, #tpu.memory_space<vmem>>, %arg3: memref<1x4x16xf32, #tpu.memory_space<vmem>>, %arg4: memref<4x4xf32, #tpu.memory_space<vmem>>, %arg5: memref<4x4xf32, #tpu.memory_space<vmem>>, %arg6: memref<1x2x4x1xf32, #tpu.memory_space<vmem>>, %arg7: memref<1x2x4x1xf32, #tpu.memory_space<vmem>>) attributes {dimension_semantics = [#tpu.dimension_semantics<parallel>, #tpu.dimension_semantics<arbitrary>], iteration_bounds = array<i64: 2, 1>, scalar_prefetch = 0 : i64, scratch_operands = 0 : i64, tpu.core_type = #tpu.core_type<tc>, window_params = [{transform_indices = @transform_0, window_bounds = array<i64: 1, 4, 16>}, {transform_indices = @transform_1, window_bounds = array<i64: 1, 4, 16>}, {pipeline_mode = #tpu.pipeline_mode<synchronous>, transform_indices = @transform_2, window_bounds = array<i64: 4, 4>}, {pipeline_mode = #tpu.pipeline_mode<synchronous>, transform_indices = @transform_3, window_bounds = array<i64: 4, 4>}, {transform_indices = @transform_4, window_bounds = array<i64: 1, 2, 4, 1>}, {transform_indices = @transform_5, window_bounds = array<i64: 1, 2, 4, 1>}]} {
    %c0_i32 = arith.constant 0 : i32
    %0 = arith.cmpi eq, %arg1, %c0_i32 : i32
    %1 = arith.extui %0 : i1 to i32
    %c0_i32_0 = arith.constant 0 : i32
    %2 = arith.cmpi ne, %1, %c0_i32_0 : i32
    scf.if %2 {
      %cst_46 = arith.constant 0.000000e+00 : f32
      %45 = vector.broadcast %cst_46 : f32 to vector<1x2x4x1xf32>
      %c0_47 = arith.constant 0 : index
      %c0_48 = arith.constant 0 : index
      %c0_49 = arith.constant 0 : index
      %c0_50 = arith.constant 0 : index
      %46 = vector.load %arg6[%c0_47, %c0_48, %c0_49, %c0_50] : memref<1x2x4x1xf32, #tpu.memory_space<vmem>>, vector<1x2x4x1xf32>
      tpu.vector_store %arg6[%c0_47, %c0_48, %c0_49, %c0_50], %45 {strides = array<i32>} : memref<1x2x4x1xf32, #tpu.memory_space<vmem>>, vector<1x2x4x1xf32>,
      %cst_51 = arith.constant 0.000000e+00 : f32
      %47 = vector.broadcast %cst_51 : f32 to vector<1x2x4x1xf32>
      %c0_52 = arith.constant 0 : index
      %c0_53 = arith.constant 0 : index
      %c0_54 = arith.constant 0 : index
      %c0_55 = arith.constant 0 : index
      %48 = vector.load %arg7[%c0_52, %c0_53, %c0_54, %c0_55] : memref<1x2x4x1xf32, #tpu.memory_space<vmem>>, vector<1x2x4x1xf32>
      tpu.vector_store %arg7[%c0_52, %c0_53, %c0_54, %c0_55], %47 {strides = array<i32>} : memref<1x2x4x1xf32, #tpu.memory_space<vmem>>, vector<1x2x4x1xf32>,
    } else {
    }
    %c0 = arith.constant 0 : index
    %c0_1 = arith.constant 0 : index
    %c0_2 = arith.constant 0 : index
    %3 = vector.load %arg2[%c0, %c0_1, %c0_2] : memref<1x4x16xf32, #tpu.memory_space<vmem>>, vector<1x4x16xf32>
    %4 = vector.shape_cast %3 : vector<1x4x16xf32> to vector<4x16xf32>
    %c0_3 = arith.constant 0 : index
    %c0_4 = arith.constant 0 : index
    %c0_5 = arith.constant 0 : index
    %5 = vector.load %arg3[%c0_3, %c0_4, %c0_5] : memref<1x4x16xf32, #tpu.memory_space<vmem>>, vector<1x4x16xf32>
    %6 = vector.shape_cast %5 : vector<1x4x16xf32> to vector<4x16xf32>
    %c0_6 = arith.constant 0 : index
    %c0_7 = arith.constant 0 : index
    %7 = vector.load %arg4[%c0_6, %c0_7] : memref<4x4xf32, #tpu.memory_space<vmem>>, vector<4x4xf32>
    %cst = arith.constant dense<0.000000e+00> : vector<4x16xf32>
    %8 = tpu.matmul %7, %4, %cst {dimension_numbers = #tpu.dot_dimension_numbers<[1], [0], [0], [1], [0, 0, 1, 1], [], []>} : vector<4x4xf32>, vector<4x16xf32>, vector<4x16xf32> -> vector<4x16xf32>
    %c0_8 = arith.constant 0 : index
    %c0_9 = arith.constant 0 : index
    %9 = vector.load %arg5[%c0_8, %c0_9] : memref<4x4xf32, #tpu.memory_space<vmem>>, vector<4x4xf32>
    %cst_10 = arith.constant dense<0.000000e+00> : vector<4x16xf32>
    %10 = tpu.matmul %9, %6, %cst_10 {dimension_numbers = #tpu.dot_dimension_numbers<[1], [0], [0], [1], [0, 0, 1, 1], [], []>} : vector<4x4xf32>, vector<4x16xf32>, vector<4x16xf32> -> vector<4x16xf32>
    %c0_11 = arith.constant 0 : index
    %c0_12 = arith.constant 0 : index
    %c0_13 = arith.constant 0 : index
    %c0_14 = arith.constant 0 : index
    %11 = vector.load %arg6[%c0_11, %c0_12, %c0_13, %c0_14] : memref<1x2x4x1xf32, #tpu.memory_space<vmem>>, vector<1x1x4x1xf32>
    %12 = vector.shape_cast %11 : vector<1x1x4x1xf32> to vector<4x1xf32>
    %cst_15 = arith.constant dense<0.000000e+00> : vector<4xf32>
    %13 = vector.multi_reduction <add>, %8, %cst_15 [1] : vector<4x16xf32> to vector<4xf32>
    %14 = vector.shape_cast %13 : vector<4xf32> to vector<4x1xf32>
    %15 = arith.addf %12, %14 : vector<4x1xf32>
    %c0_16 = arith.constant 0 : index
    %c0_17 = arith.constant 0 : index
    %c0_18 = arith.constant 0 : index
    %c0_19 = arith.constant 0 : index
    %16 = vector.load %arg6[%c0_16, %c0_17, %c0_18, %c0_19] : memref<1x2x4x1xf32, #tpu.memory_space<vmem>>, vector<1x1x4x1xf32>
    %17 = vector.shape_cast %16 : vector<1x1x4x1xf32> to vector<4x1xf32>
    %18 = vector.shape_cast %15 : vector<4x1xf32> to vector<1x1x4x1xf32>
    tpu.vector_store %arg6[%c0_16, %c0_17, %c0_18, %c0_19], %18 {strides = array<i32>} : memref<1x2x4x1xf32, #tpu.memory_space<vmem>>, vector<1x1x4x1xf32>,
    %c0_20 = arith.constant 0 : index
    %c1 = arith.constant 1 : index
    %c0_21 = arith.constant 0 : index
    %c0_22 = arith.constant 0 : index
    %19 = vector.load %arg6[%c0_20, %c1, %c0_21, %c0_22] : memref<1x2x4x1xf32, #tpu.memory_space<vmem>>, vector<1x1x4x1xf32>
    %20 = vector.shape_cast %19 : vector<1x1x4x1xf32> to vector<4x1xf32>
    %cst_23 = arith.constant dense<0.000000e+00> : vector<4xf32>
    %21 = vector.multi_reduction <add>, %10, %cst_23 [1] : vector<4x16xf32> to vector<4xf32>
    %22 = vector.shape_cast %21 : vector<4xf32> to vector<4x1xf32>
    %23 = arith.addf %20, %22 : vector<4x1xf32>
    %c0_24 = arith.constant 0 : index
    %c1_25 = arith.constant 1 : index
    %c0_26 = arith.constant 0 : index
    %c0_27 = arith.constant 0 : index
    %24 = vector.load %arg6[%c0_24, %c1_25, %c0_26, %c0_27] : memref<1x2x4x1xf32, #tpu.memory_space<vmem>>, vector<1x1x4x1xf32>
    %25 = vector.shape_cast %24 : vector<1x1x4x1xf32> to vector<4x1xf32>
    %26 = vector.shape_cast %23 : vector<4x1xf32> to vector<1x1x4x1xf32>
    tpu.vector_store %arg6[%c0_24, %c1_25, %c0_26, %c0_27], %26 {strides = array<i32>} : memref<1x2x4x1xf32, #tpu.memory_space<vmem>>, vector<1x1x4x1xf32>,
    %c0_28 = arith.constant 0 : index
    %c0_29 = arith.constant 0 : index
    %c0_30 = arith.constant 0 : index
    %c0_31 = arith.constant 0 : index
    %27 = vector.load %arg7[%c0_28, %c0_29, %c0_30, %c0_31] : memref<1x2x4x1xf32, #tpu.memory_space<vmem>>, vector<1x1x4x1xf32>
    %28 = vector.shape_cast %27 : vector<1x1x4x1xf32> to vector<4x1xf32>
    %29 = arith.mulf %8, %8 : vector<4x16xf32>
    %cst_32 = arith.constant dense<0.000000e+00> : vector<4xf32>
    %30 = vector.multi_reduction <add>, %29, %cst_32 [1] : vector<4x16xf32> to vector<4xf32>
    %31 = vector.shape_cast %30 : vector<4xf32> to vector<4x1xf32>
    %32 = arith.addf %28, %31 : vector<4x1xf32>
    %c0_33 = arith.constant 0 : index
    %c0_34 = arith.constant 0 : index
    %c0_35 = arith.constant 0 : index
    %c0_36 = arith.constant 0 : index
    %33 = vector.load %arg7[%c0_33, %c0_34, %c0_35, %c0_36] : memref<1x2x4x1xf32, #tpu.memory_space<vmem>>, vector<1x1x4x1xf32>
    %34 = vector.shape_cast %33 : vector<1x1x4x1xf32> to vector<4x1xf32>
    %35 = vector.shape_cast %32 : vector<4x1xf32> to vector<1x1x4x1xf32>
    tpu.vector_store %arg7[%c0_33, %c0_34, %c0_35, %c0_36], %35 {strides = array<i32>} : memref<1x2x4x1xf32, #tpu.memory_space<vmem>>, vector<1x1x4x1xf32>,
    %c0_37 = arith.constant 0 : index
    %c1_38 = arith.constant 1 : index
    %c0_39 = arith.constant 0 : index
    %c0_40 = arith.constant 0 : index
    %36 = vector.load %arg7[%c0_37, %c1_38, %c0_39, %c0_40] : memref<1x2x4x1xf32, #tpu.memory_space<vmem>>, vector<1x1x4x1xf32>
    %37 = vector.shape_cast %36 : vector<1x1x4x1xf32> to vector<4x1xf32>
    %38 = arith.mulf %10, %10 : vector<4x16xf32>
    %cst_41 = arith.constant dense<0.000000e+00> : vector<4xf32>
    %39 = vector.multi_reduction <add>, %38, %cst_41 [1] : vector<4x16xf32> to vector<4xf32>
    %40 = vector.shape_cast %39 : vector<4xf32> to vector<4x1xf32>
    %41 = arith.addf %37, %40 : vector<4x1xf32>
    %c0_42 = arith.constant 0 : index
    %c1_43 = arith.constant 1 : index
    %c0_44 = arith.constant 0 : index
    %c0_45 = arith.constant 0 : index
    %42 = vector.load %arg7[%c0_42, %c1_43, %c0_44, %c0_45] : memref<1x2x4x1xf32, #tpu.memory_space<vmem>>, vector<1x1x4x1xf32>
    %43 = vector.shape_cast %42 : vector<1x1x4x1xf32> to vector<4x1xf32>
    %44 = vector.shape_cast %41 : vector<4x1xf32> to vector<1x1x4x1xf32>
    tpu.vector_store %arg7[%c0_42, %c1_43, %c0_44, %c0_45], %44 {strides = array<i32>} : memref<1x2x4x1xf32, #tpu.memory_space<vmem>>, vector<1x1x4x1xf32>,
    return
  }
  func.func @transform_0(%arg0: i32, %arg1: i32) -> (i32, i32, i32) {
    %c0_i32 = arith.constant 0 : i32
    %c0_i32_0 = arith.constant 0 : i32
    return %arg0, %c0_i32, %arg1 : i32, i32, i32
  }
  func.func @transform_1(%arg0: i32, %arg1: i32) -> (i32, i32, i32) {
    %c0_i32 = arith.constant 0 : i32
    %c0_i32_0 = arith.constant 0 : i32
    return %arg0, %c0_i32, %arg1 : i32, i32, i32
  }
  func.func @transform_2(%arg0: i32, %arg1: i32) -> (i32, i32) {
    %c0_i32 = arith.constant 0 : i32
    %c0_i32_0 = arith.constant 0 : i32
    %c0_i32_1 = arith.constant 0 : i32
    return %c0_i32, %c0_i32_0 : i32, i32
  }
  func.func @transform_3(%arg0: i32, %arg1: i32) -> (i32, i32) {
    %c0_i32 = arith.constant 0 : i32
    %c0_i32_0 = arith.constant 0 : i32
    %c0_i32_1 = arith.constant 0 : i32
    return %c0_i32, %c0_i32_0 : i32, i32
  }
  func.func @transform_4(%arg0: i32, %arg1: i32) -> (i32, i32, i32, i32) {
    %c0_i32 = arith.constant 0 : i32
    %c0_i32_0 = arith.constant 0 : i32
    %c0_i32_1 = arith.constant 0 : i32
    %c0_i32_2 = arith.constant 0 : i32
    return %arg0, %c0_i32, %c0_i32_0, %c0_i32_1 : i32, i32, i32, i32
  }
  func.func @transform_5(%arg0: i32, %arg1: i32) -> (i32, i32, i32, i32) {
    %c0_i32 = arith.constant 0 : i32
    %c0_i32_0 = arith.constant 0 : i32
    %c0_i32_1 = arith.constant 0 : i32
    %c0_i32_2 = arith.constant 0 : i32
    return %arg0, %c0_i32, %c0_i32_0, %c0_i32_1 : i32, i32, i32, i32
  }
}

module attributes {stable_mosaic.version = 11 : i64} {
  func.func @_norm_kernel(%arg0: i32, %arg1: i32, %arg2: memref<1x4x16xf32, #tpu.memory_space<vmem>>, %arg3: memref<1x4x16xf32, #tpu.memory_space<vmem>>, %arg4: memref<4x4xf32, #tpu.memory_space<vmem>>, %arg5: memref<4x4xf32, #tpu.memory_space<vmem>>, %arg6: memref<2x4x1xf32, #tpu.memory_space<vmem>>, %arg7: memref<2x4x1xf32, #tpu.memory_space<vmem>>, %arg8: memref<1x2x4x16xf32, #tpu.memory_space<vmem>>) attributes {dimension_semantics = [#tpu.dimension_semantics<parallel>, #tpu.dimension_semantics<parallel>], iteration_bounds = array<i64: 2, 1>, scalar_prefetch = 0 : i64, scratch_operands = 0 : i64, tpu.core_type = #tpu.core_type<tc>, window_params = [{transform_indices = @transform_0, window_bounds = array<i64: 1, 4, 16>}, {transform_indices = @transform_1, window_bounds = array<i64: 1, 4, 16>}, {pipeline_mode = #tpu.pipeline_mode<synchronous>, transform_indices = @transform_2, window_bounds = array<i64: 4, 4>}, {pipeline_mode = #tpu.pipeline_mode<synchronous>, transform_indices = @transform_3, window_bounds = array<i64: 4, 4>}, {pipeline_mode = #tpu.pipeline_mode<synchronous>, transform_indices = @transform_4, window_bounds = array<i64: 2, 4, 1>}, {pipeline_mode = #tpu.pipeline_mode<synchronous>, transform_indices = @transform_5, window_bounds = array<i64: 2, 4, 1>}, {transform_indices = @transform_6, window_bounds = array<i64: 1, 2, 4, 16>}]} {
    %c0 = arith.constant 0 : index
    %c0_0 = arith.constant 0 : index
    %c0_1 = arith.constant 0 : index
    %0 = vector.load %arg2[%c0, %c0_0, %c0_1] : memref<1x4x16xf32, #tpu.memory_space<vmem>>, vector<1x4x16xf32>
    %1 = vector.shape_cast %0 : vector<1x4x16xf32> to vector<4x16xf32>
    %c0_2 = arith.constant 0 : index
    %c0_3 = arith.constant 0 : index
    %c0_4 = arith.constant 0 : index
    %2 = vector.load %arg3[%c0_2, %c0_3, %c0_4] : memref<1x4x16xf32, #tpu.memory_space<vmem>>, vector<1x4x16xf32>
    %3 = vector.shape_cast %2 : vector<1x4x16xf32> to vector<4x16xf32>
    %c0_5 = arith.constant 0 : index
    %c0_6 = arith.constant 0 : index
    %4 = vector.load %arg4[%c0_5, %c0_6] : memref<4x4xf32, #tpu.memory_space<vmem>>, vector<4x4xf32>
    %cst = arith.constant dense<0.000000e+00> : vector<4x16xf32>
    %5 = tpu.matmul %4, %1, %cst {dimension_numbers = #tpu.dot_dimension_numbers<[1], [0], [0], [1], [0, 0, 1, 1], [], []>} : vector<4x4xf32>, vector<4x16xf32>, vector<4x16xf32> -> vector<4x16xf32>
    %c0_7 = arith.constant 0 : index
    %c0_8 = arith.constant 0 : index
    %6 = vector.load %arg5[%c0_7, %c0_8] : memref<4x4xf32, #tpu.memory_space<vmem>>, vector<4x4xf32>
    %cst_9 = arith.constant dense<0.000000e+00> : vector<4x16xf32>
    %7 = tpu.matmul %6, %3, %cst_9 {dimension_numbers = #tpu.dot_dimension_numbers<[1], [0], [0], [1], [0, 0, 1, 1], [], []>} : vector<4x4xf32>, vector<4x16xf32>, vector<4x16xf32> -> vector<4x16xf32>
    %c0_10 = arith.constant 0 : index
    %c0_11 = arith.constant 0 : index
    %c0_12 = arith.constant 0 : index
    %8 = vector.load %arg6[%c0_10, %c0_11, %c0_12] : memref<2x4x1xf32, #tpu.memory_space<vmem>>, vector<1x4x1xf32>
    %9 = vector.shape_cast %8 : vector<1x4x1xf32> to vector<4x1xf32>
    %10 = vector.broadcast %9 : vector<4x1xf32> to vector<4x16xf32>
    %11 = arith.mulf %5, %10 : vector<4x16xf32>
    %c0_13 = arith.constant 0 : index
    %c0_14 = arith.constant 0 : index
    %c0_15 = arith.constant 0 : index
    %12 = vector.load %arg7[%c0_13, %c0_14, %c0_15] : memref<2x4x1xf32, #tpu.memory_space<vmem>>, vector<1x4x1xf32>
    %13 = vector.shape_cast %12 : vector<1x4x1xf32> to vector<4x1xf32>
    %14 = vector.broadcast %13 : vector<4x1xf32> to vector<4x16xf32>
    %15 = arith.addf %11, %14 : vector<4x16xf32>
    %cst_16 = arith.constant 0.000000e+00 : f32
    %16 = vector.broadcast %cst_16 : f32 to vector<4x16xf32>
    %17 = arith.maximumf %15, %16 : vector<4x16xf32>
    %c0_17 = arith.constant 0 : index
    %c0_18 = arith.constant 0 : index
    %c0_19 = arith.constant 0 : index
    %c0_20 = arith.constant 0 : index
    %18 = vector.load %arg8[%c0_17, %c0_18, %c0_19, %c0_20] : memref<1x2x4x16xf32, #tpu.memory_space<vmem>>, vector<1x1x4x16xf32>
    %19 = vector.shape_cast %18 : vector<1x1x4x16xf32> to vector<4x16xf32>
    %20 = vector.shape_cast %17 : vector<4x16xf32> to vector<1x1x4x16xf32>
    tpu.vector_store %arg8[%c0_17, %c0_18, %c0_19, %c0_20], %20 {strides = array<i32>} : memref<1x2x4x16xf32, #tpu.memory_space<vmem>>, vector<1x1x4x16xf32>,
    %c1 = arith.constant 1 : index
    %c0_21 = arith.constant 0 : index
    %c0_22 = arith.constant 0 : index
    %21 = vector.load %arg6[%c1, %c0_21, %c0_22] : memref<2x4x1xf32, #tpu.memory_space<vmem>>, vector<1x4x1xf32>
    %22 = vector.shape_cast %21 : vector<1x4x1xf32> to vector<4x1xf32>
    %23 = vector.broadcast %22 : vector<4x1xf32> to vector<4x16xf32>
    %24 = arith.mulf %7, %23 : vector<4x16xf32>
    %c1_23 = arith.constant 1 : index
    %c0_24 = arith.constant 0 : index
    %c0_25 = arith.constant 0 : index
    %25 = vector.load %arg7[%c1_23, %c0_24, %c0_25] : memref<2x4x1xf32, #tpu.memory_space<vmem>>, vector<1x4x1xf32>
    %26 = vector.shape_cast %25 : vector<1x4x1xf32> to vector<4x1xf32>
    %27 = vector.broadcast %26 : vector<4x1xf32> to vector<4x16xf32>
    %28 = arith.addf %24, %27 : vector<4x16xf32>
    %cst_26 = arith.constant 0.000000e+00 : f32
    %29 = vector.broadcast %cst_26 : f32 to vector<4x16xf32>
    %30 = arith.maximumf %28, %29 : vector<4x16xf32>
    %c0_27 = arith.constant 0 : index
    %c1_28 = arith.constant 1 : index
    %c0_29 = arith.constant 0 : index
    %c0_30 = arith.constant 0 : index
    %31 = vector.load %arg8[%c0_27, %c1_28, %c0_29, %c0_30] : memref<1x2x4x16xf32, #tpu.memory_space<vmem>>, vector<1x1x4x16xf32>
    %32 = vector.shape_cast %31 : vector<1x1x4x16xf32> to vector<4x16xf32>
    %33 = vector.shape_cast %30 : vector<4x16xf32> to vector<1x1x4x16xf32>
    tpu.vector_store %arg8[%c0_27, %c1_28, %c0_29, %c0_30], %33 {strides = array<i32>} : memref<1x2x4x16xf32, #tpu.memory_space<vmem>>, vector<1x1x4x16xf32>,
    return
  }
  func.func @transform_0(%arg0: i32, %arg1: i32) -> (i32, i32, i32) {
    %c0_i32 = arith.constant 0 : i32
    %c0_i32_0 = arith.constant 0 : i32
    return %arg0, %c0_i32, %arg1 : i32, i32, i32
  }
  func.func @transform_1(%arg0: i32, %arg1: i32) -> (i32, i32, i32) {
    %c0_i32 = arith.constant 0 : i32
    %c0_i32_0 = arith.constant 0 : i32
    return %arg0, %c0_i32, %arg1 : i32, i32, i32
  }
  func.func @transform_2(%arg0: i32, %arg1: i32) -> (i32, i32) {
    %c0_i32 = arith.constant 0 : i32
    %c0_i32_0 = arith.constant 0 : i32
    %c0_i32_1 = arith.constant 0 : i32
    return %c0_i32, %c0_i32_0 : i32, i32
  }
  func.func @transform_3(%arg0: i32, %arg1: i32) -> (i32, i32) {
    %c0_i32 = arith.constant 0 : i32
    %c0_i32_0 = arith.constant 0 : i32
    %c0_i32_1 = arith.constant 0 : i32
    return %c0_i32, %c0_i32_0 : i32, i32
  }
  func.func @transform_4(%arg0: i32, %arg1: i32) -> (i32, i32, i32) {
    %c0_i32 = arith.constant 0 : i32
    %c0_i32_0 = arith.constant 0 : i32
    %c0_i32_1 = arith.constant 0 : i32
    %c0_i32_2 = arith.constant 0 : i32
    return %c0_i32, %c0_i32_0, %c0_i32_1 : i32, i32, i32
  }
  func.func @transform_5(%arg0: i32, %arg1: i32) -> (i32, i32, i32) {
    %c0_i32 = arith.constant 0 : i32
    %c0_i32_0 = arith.constant 0 : i32
    %c0_i32_1 = arith.constant 0 : i32
    %c0_i32_2 = arith.constant 0 : i32
    return %c0_i32, %c0_i32_0, %c0_i32_1 : i32, i32, i32
  }
  func.func @transform_6(%arg0: i32, %arg1: i32) -> (i32, i32, i32, i32) {
    %c0_i32 = arith.constant 0 : i32
    %c0_i32_0 = arith.constant 0 : i32
    %c0_i32_1 = arith.constant 0 : i32
    return %arg0, %c0_i32, %c0_i32_0, %arg1 : i32, i32, i32, i32
  }
}

</mosaic_0001>

<bundles_post_ra>
// kernel: double_factorized_reduce.2
= control target key start
LH: loop header
LB: loop body
LE: loop exit
PB: predicated region body
PF: predicated region fallthrough
CT: control target
= control target key end

     0   :  { %s716_s18 = smov 0   ;;  %s718_s19 = smov 0   ;;  %s785_s0 = inlined_call_operand.vmem [shape: f32[2,4,16], index: 0, kind: input, shape index: {}]   ;;  %s786_s1 = inlined_call_operand.vmem [shape: f32[2,4,16], index: 1, kind: input, shape index: {}]   ;;  %s787_s2 = inlined_call_operand.vmem [shape: f32[4,4], index: 2, kind: input, shape index: {}]   ;;  %s788_s3 = inlined_call_operand.vmem [shape: f32[4,4], index: 3, kind: input, shape index: {}]   ;;  %s789_s4 = inlined_call_operand.vmem [shape: f32[2,2,4,1], index: 4, kind: output, shape index: {0}]   ;;  %s790_s5 = inlined_call_operand.vmem [shape: f32[2,2,4,1], index: 5, kind: output, shape index: {1}]  }
   0x1   :  { %s720_s20 = smov 0  }
   0x2 LB: > { %s28_s21 = sadd.s32 1, %s678_s19  ;;  %p601_p0 = scmp.ge.s32.totalorder %s682_s20, 1  ;;  %s682_s20 = sphi %s720_s20, %s16_s20   ;;  %s678_s19 = sphi %s718_s19, %s792_s19   ;;  %s674_s18 = sphi %s716_s18, %s791_s18  }
   0x3   : > { %p30_p1 = scmp.ge.s32.totalorder %s28_s21, 2  ;;  %p220_p2 = scmp.lt.s32.totalorder %s682_s20, 3 }
   0x5   : > { %s794_s21 = smov (%p30_p1, %s28_s21), 0  ;;  %p221_p3 = pnand %p601_p0, %p220_p2 }
   0x6   : > { %p262_p4 = scmp.lt.s32.totalorder (!%p221_p3), %s674_s18, 1 }
   0x7   : > { %224 = sbr.rel (%p221_p3) target bundleno = 358 (0x166), region = 36 }
   0xc   : > { %v684_v0 = vmov 0.0   ;;  %vm685_vm0 = vmmov 0   ;;  %s796_s18 = smov (!%p262_p4, %s674_s18), 1  ;;  %vm302_vm1 = vcmask 1043456   ;;  %v297_v1 = vld [vmem:[%s787_s2] sm:$0xf] }
   0xd   : > { %624 = vmatprep.subr.mxu0 %v684_v0  ;;  %626 = vmatprep.mubr.msk.f32.mxu0 %vm685_vm0, %v684_v0  ;;  %s602_s22 = sshll.u32 %s796_s18, 2  ;;  %vm298_vm2 = vcmask 31744   ;;  %v376_v3 = vld [vmem:[%s788_s3] sm:$0xf]  ;;  %s618_s8 = sshll.u32 %s796_s18, 3  ;;  %vm290_vm3 = vcmask 3072  }
   0xe   : > { %629 = vmatprep.subr.mxu1 %v684_v0  ;;  %631 = vmatprep.mubr.msk.f32.mxu1 %vm685_vm0, %v684_v0  ;;  %s268_s25 = scalar_lea.vmem %s785_s0, %s602_s22  ;;  %s275_s30 = scalar_lea.vmem %s786_s1, %s602_s22  ;;  %vm454_vm4 = vcmask 125952  }
   0xf   : > { %v295_v2 = vld [vmem:[%s268_s25] sm:$0xf]  ;;  %s749_s11 = scalar_lea.vmem %s789_s4, %s618_s8  ;;  %s754_s14 = scalar_lea.vmem %s790_s5, %s618_s8 }
  0x10   : > { %625 = vmatpush3.msk.msra.mxu0 %vm302_vm1, %v295_v2  ;;  %v296_v4 = vld [vmem:[%s275_s30] sm:$0xf]  ;;  %291 = vst.msk [vmem:[%s749_s11] sm:$0xf] %vm290_vm3, %v684_v0  ;;  %292 = vst.msk [vmem:[%s749_s11 + $0x4] sm:$0xf] %vm290_vm3, %v684_v0 }
  0x11   : > { %627 = vmatmul.mubr.msk.f32.vlgmr.msra.gmra.mxu0 %vm298_vm2, %v297_v1  ;;  %630 = vmatpush3.msk.msra.mxu1 %vm302_vm1, %v296_v4  ;;  %293 = vst.msk [vmem:[%s754_s14] sm:$0xf] %vm290_vm3, %v684_v0  ;;  %294 = vst.msk [vmem:[%s754_s14 + $0x4] sm:$0xf] %vm290_vm3, %v684_v0 }
  0x12   : > { %632 = vmatmul.mubr.msk.f32.vlgmr.msra.gmra.mxu1 %vm298_vm2, %v376_v3 }
  0x17   : > { %v453_v15 = vld [vmem:[%s749_s11] sm:$0xf]  ;;  %v612_v20 = vld [vmem:[%s749_s11 + $0x4] sm:$0xf] }
  0x18   : > { %v468_v17 = vld [vmem:[%s754_s14] sm:$0xf]  ;;  %v614_v23 = vld [vmem:[%s754_s14 + $0x4] sm:$0xf] }
  0xd1   : > { %v372_v5 = vpop.f32.mrf.mxu0 }
  0xd2   : > { %v449_v6 = vpop.f32.mrf.mxu1  ;;  %v455_v7 = vsel %vm454_vm4, %v372_v5, 0.0  ;;  %v469_v8 = vmul.f32 %v372_v5, %v372_v5 }
  0xd3   : > { %v477_v9 = vmul.f32 %v449_v6, %v449_v6  ;;  %456 = vadd.xlane.f32.xlu0 %v455_v7  ;;  %v628_v10 = vpop.f32.mrf.mxu0  ;;  %v463_v13 = vsel %vm454_vm4, %v449_v6, 0.0 }
  0xd4   : > { %v633_v11 = vpop.f32.mrf.mxu1  ;;  %v470_v12 = vsel %vm454_vm4, %v469_v8, 0.0 }
  0xd5   : > { %471 = vadd.xlane.f32.xlu1 %v470_v12  ;;  %v478_v14 = vsel %vm454_vm4, %v477_v9, 0.0 }
  0xd7   : > { %464 = vadd.xlane.f32.xlu0 %v463_v13 }
  0xd9   : > { %479 = vadd.xlane.f32.xlu1 %v478_v14 }
 0x15c   : > { %v457_v16 = vpop.xlane.xlu0 %456 }
 0x15d   : > { %v458_v18 = vadd.f32 %v457_v16, %v453_v15 }
 0x15e   : > { %v472_v19 = vpop.xlane.xlu1 %471 }
 0x15f   : > { %460 = vst.msk [vmem:[%s749_s11] sm:$0xf] %vm290_vm3, %v458_v18  ;;  %v473_v21 = vadd.f32 %v472_v19, %v468_v17 }
 0x160   : > { %v465_v22 = vpop.xlane.xlu0 %464 }
 0x161   : > { %474 = vst.msk [vmem:[%s754_s14] sm:$0xf] %vm290_vm3, %v473_v21  ;;  %v466_v24 = vadd.f32 %v612_v20, %v465_v22 }
 0x162   : > { %v480_v25 = vpop.xlane.xlu1 %479 }
 0x163   : > { %613 = vst.msk [vmem:[%s749_s11 + $0x4] sm:$0xf] %vm290_vm3, %v466_v24  ;;  %v481_v26 = vadd.f32 %v614_v23, %v480_v25 }
 0x165   : > { %615 = vst.msk [vmem:[%s754_s14 + $0x4] sm:$0xf] %vm290_vm3, %v481_v26 }
 0x166 PF: > { %s16_s20 = sadd.s32 1, %s682_s20   ;;  %s791_s18 = smov %s678_s19 }
 0x167   : > { %p13_p5 = scmp.ge.s32.totalorder %s16_s20, 4   ;;  %s792_s19 = smov %s794_s21 }
 0x169   :  { %15 = sbr.rel (!%p13_p5) target bundleno = 2 (0x2), region = 87 }

// kernel: double_factorized_reduce.3
= control target key start
LH: loop header
LB: loop body
LE: loop exit
PB: predicated region body
PF: predicated region fallthrough
CT: control target
= control target key end

     0   :  { %s721_s21 = smov 0   ;;  %s723_s22 = smov 0   ;;  %s779_s0 = inlined_call_operand.vmem [shape: f32[2,4,16], index: 0, kind: input, shape index: {}]   ;;  %s780_s1 = inlined_call_operand.vmem [shape: f32[2,4,16], index: 1, kind: input, shape index: {}]   ;;  %s781_s2 = inlined_call_operand.vmem [shape: f32[4,4], index: 2, kind: input, shape index: {}]   ;;  %s782_s3 = inlined_call_operand.vmem [shape: f32[4,4], index: 3, kind: input, shape index: {}]   ;;  %s783_s4 = inlined_call_operand.vmem [shape: f32[2,4,1], index: 4, kind: input, shape index: {}]   ;;  %s784_s5 = inlined_call_operand.vmem [shape: f32[2,4,1], index: 5, kind: input, shape index: {}]   ;;  %s785_s6 = inlined_call_operand.vmem [shape: f32[2,2,4,16], index: 6, kind: output, shape index: {}]  }
   0x1   :  { %s725_s23 = smov 0  }
   0x2 LB: > { %s28_s24 = sadd.s32 1, %s677_s22  ;;  %p601_p0 = scmp.ge.s32.totalorder %s681_s23, 1  ;;  %s681_s23 = sphi %s725_s23, %s16_s23   ;;  %s677_s22 = sphi %s723_s22, %s787_s22   ;;  %s673_s21 = sphi %s721_s21, %s786_s21  }
   0x3   : > { %p30_p1 = scmp.ge.s32.totalorder %s28_s24, 2  ;;  %p244_p2 = scmp.lt.s32.totalorder %s681_s23, 3 }
   0x5   : > { %s789_s24 = smov (%p30_p1, %s28_s24), 0  ;;  %p245_p3 = pnand %p601_p0, %p244_p2 }
   0x6   : > { %p286_p4 = scmp.lt.s32.totalorder (!%p245_p3), %s673_s21, 1 }
   0x7   : > { %248 = sbr.rel (%p245_p3) target bundleno = 219 (0xdb), region = 44 }
   0xc   : > { %v683_v0 = vmov 0.0   ;;  %v466_v1 = vld [vmem:[%s783_s4] sm:$0xf]  ;;  %s791_s21 = smov (!%p286_p4, %s673_s21), 1  ;;  %vm684_vm0 = vmmov 0   ;;  %v685_v3 = vmov 0  }
   0xd   : > { %620 = vmatprep.subr.mxu0 %v683_v0  ;;  %625 = vmatprep.subr.mxu1 %v683_v0  ;;  %v473_v2 = vld [vmem:[%s784_s5] sm:$0xf]  ;;  %s602_s29 = sshll.u32 %s791_s21, 2  ;;  %vm315_vm1 = vcmask 1043456   ;;  %vm311_vm2 = vcmask 31744   ;;  %s615_s20 = sshll.u32 %s791_s21, 3 }
   0xe   : > { %622 = vmatprep.mubr.msk.f32.mxu0 %vm684_vm0, %v683_v0  ;;  %627 = vmatprep.mubr.msk.f32.mxu1 %vm684_vm0, %v683_v0  ;;  %s292_s8 = scalar_lea.vmem %s779_s0, %s602_s29  ;;  %v310_v4 = vld [vmem:[%s781_s2] sm:$0xf]  ;;  %s299_s13 = scalar_lea.vmem %s780_s1, %s602_s29  ;;  %v610_v7 = vld [vmem:[%s783_s4 + $0x4] sm:$0xf]  ;;  %vm481_vm3 = vcmask 125952  }
   0xf   : > { %657 = vset.pattern.permute.xlu0 %v685_v3  ;;  %658 = vset.pattern.permute.xlu1 %v685_v3  ;;  %v308_v5 = vld [vmem:[%s292_s8] sm:$0xf]  ;;  %v611_v9 = vld [vmem:[%s784_s5 + $0x4] sm:$0xf]  ;;  %s307_s27 = scalar_lea.vmem %s785_s6, %s615_s20 }
  0x10   : > { %469 = vperm.xlu0 %657, %v466_v1   ;;  %476 = vperm.xlu1 %658, %v473_v2   ;;  %v389_v6 = vld [vmem:[%s782_s3] sm:$0xf] }
  0x11   : > { %621 = vmatpush3.msk.msra.mxu0 %vm315_vm1, %v308_v5  ;;  %v309_v8 = vld [vmem:[%s299_s13] sm:$0xf] }
  0x12   : > { %626 = vmatpush3.msk.msra.mxu1 %vm315_vm1, %v309_v8  ;;  %623 = vmatmul.mubr.msk.f32.vlgmr.msra.gmra.mxu0 %vm311_vm2, %v310_v4 }
  0x13   : > { %628 = vmatmul.mubr.msk.f32.vlgmr.msra.gmra.mxu1 %vm311_vm2, %v389_v6 }
  0x14   : > { %487 = vperm.xlu0 %657, %v610_v7   ;;  %495 = vperm.xlu1 %658, %v611_v9  }
  0x8b   : > { %v470_v10 = vpop.permute.xlu0 %469  ;;  %v477_v11 = vpop.permute.xlu1 %476 }
  0x8f   : > { %v488_v13 = vpop.permute.xlu0 %487  ;;  %v496_v18 = vpop.permute.xlu1 %495 }
  0xd2   : > { %v385_v12 = vpop.f32.mrf.mxu0 }
  0xd3   : > { %v472_v14 = vmul.f32 %v470_v10, %v385_v12  ;;  %v462_v15 = vpop.f32.mrf.mxu1 }
  0xd4   : > { %v490_v16 = vmul.f32 %v488_v13, %v462_v15  ;;  %v624_v17 = vpop.f32.mrf.mxu0 }
  0xd5   : > { %v479_v19 = vadd.f32 %v477_v11, %v472_v14  ;;  %v629_v20 = vpop.f32.mrf.mxu1 }
  0xd6   : > { %v498_v21 = vadd.f32 %v496_v18, %v490_v16 }
  0xd7   : > { %v480_v22 = vmax.f32 %v479_v19, 0.0 }
  0xd8   : > { %v499_v23 = vmax.f32 %v498_v21, 0.0 }
  0xd9   : > { %482 = vst.msk [vmem:[%s307_s27] sm:$0xf] %vm481_vm3, %v480_v22 }
  0xda   : > { %612 = vst.msk [vmem:[%s307_s27 + $0x4] sm:$0xf] %vm481_vm3, %v499_v23 }
  0xdb PF: > { %s16_s23 = sadd.s32 1, %s681_s23   ;;  %s786_s21 = smov %s677_s22 }
  0xdc   : > { %p13_p5 = scmp.ge.s32.totalorder %s16_s23, 4   ;;  %s787_s22 = smov %s789_s24 }
  0xde   :  { %15 = sbr.rel (!%p13_p5) target bundleno = 2 (0x2), region = 80 }

</bundles_post_ra>
